<compile_context>
chip_gen: v5e
topology: v5e:2x2
jax: 0.10.0
libtpu: 0.0.40
codegen_flags: <defaults>
</compile_context>

<pallas_src>
import functools

import jax
import jax.numpy as jnp
from jax.experimental import pallas as pl
from jax.experimental.pallas import tpu as pltpu


def _tensorcores_per_chip() -> int:
    """Best-effort TensorCore-per-chip count (v7x has 2); defaults to 1."""
    try:
        info = pltpu.get_tpu_info()
    except Exception:
        return 1
    for attr in ("num_cores", "core_count", "cores_per_chip", "tensorcore_count"):
        v = getattr(info, attr, None)
        if isinstance(v, int) and v > 0:
            return v
    return 1


def _conv3x3_kernel(wb_ref, x_ref, o_ref, *, W: int):
    """Direct 3x3 'same' conv (single output channel) on flattened H*W lanes.

    wb_ref: SMEM (1 + 9*C,) f32  -- [bias, weight[0].flatten()] (scalar prefetch)
    x_ref:  VMEM (BN, C, HW)     -- BN images per grid step, lane-dense planes
    o_ref:  VMEM (BN, 1, HW)     -- lane-dense output
    """
    BN, C, HW = x_ref.shape

    # ---- Hoist all scalar reads (bias + 9*C weights) out of the FMA loops. ----
    bias = wb_ref[0]
    wts = [[[wb_ref[1 + c * 9 + kh * 3 + kw] for kw in range(3)]
            for kh in range(3)] for c in range(C)]

    # ---- Border masks, built once from a flat lane iota (hoisted). ----
    idx = jax.lax.broadcasted_iota(jnp.int32, (BN, HW), 1)
    col = idx % W
    left_ok = col > 0                 # reading x[.., w-1] is in bounds
    right_ok = col < (W - 1)          # reading x[.., w+1] is in bounds
    up_ok = idx >= W                  # reading x[.., h-1, :] is in bounds
    down_ok = idx < (HW - W)          # reading x[.., h+1, :] is in bounds

    zero = jnp.zeros((BN, HW), jnp.float32)

    # ---- Column-shifted (and column-masked) channel planes, built once. ----
    # roll follows jnp.roll convention: roll(x, s)[p] = x[p - s].
    planes = []
    for c in range(C):
        x0 = x_ref[:, c, :].astype(jnp.float32)                              # (BN, HW)
        xm = jnp.where(left_ok, pltpu.roll(x0, shift=1, axis=1), zero)        # x[.., w-1]
        xp = jnp.where(right_ok, pltpu.roll(x0, shift=HW - 1, axis=1), zero)  # x[.., w+1]
        planes.append((xm, x0, xp))

    # ---- Accumulate the 3 kernel rows; row shift/mask applied once per row. ----
    acc = jnp.full((BN, HW), bias, dtype=jnp.float32)
    for kh, dh in ((0, -1), (1, 0), (2, 1)):
        s = zero
        for c in range(C):
            xm, x0, xp = planes[c]
            s = s + xm * wts[c][kh][0] + x0 * wts[c][kh][1] + xp * wts[c][kh][2]
        if dh == 0:
            acc = acc + s
        elif dh < 0:   # needs s at row h-1  ->  s[p - W]
            acc = acc + jnp.where(up_ok, pltpu.roll(s, shift=W, axis=1), zero)
        else:          # needs s at row h+1  ->  s[p + W]
            acc = acc + jnp.where(down_ok, pltpu.roll(s, shift=HW - W, axis=1), zero)

    o_ref[:, 0, :] = acc.astype(o_ref.dtype)


def multimodal_regression_forward(x_nchw, weight, bias, *, images_per_step=None):
    """x_nchw: (N, C, H, W); weight: (1, C, 3, 3); bias: (1,). Returns (N, 1, H, W)."""
    N, C, H, W = x_nchw.shape
    HW = H * W

    # Collapsed grid on single-TC chips (v5e/v6e); one image per core on v7x.
    if images_per_step is None:
        images_per_step = N if _tensorcores_per_chip() <= 1 else 1
    images_per_step = max(1, min(images_per_step, N))
    while N % images_per_step:
        images_per_step -= 1
    n_steps = N // images_per_step

    # Lane-dense layout: flatten each (H, W) plane into H*W lanes (free reshape).
    x_flat = x_nchw.reshape(N, C, HW)

    # Scalar-prefetch array: index 0 = bias, 1 + c*9 + kh*3 + kw = weight[0,c,kh,kw].
    wb = jnp.concatenate([
        bias.astype(jnp.float32).reshape(-1),
        weight.astype(jnp.float32).reshape(-1),
    ])

    kernel = functools.partial(_conv3x3_kernel, W=W)

    out_flat = pl.pallas_call(
        kernel,
        out_shape=jax.ShapeDtypeStruct((N, 1, HW), x_nchw.dtype),
        grid_spec=pltpu.PrefetchScalarGridSpec(
            num_scalar_prefetch=1,          # wb -> SMEM
            grid=(n_steps,),
            in_specs=[
                pl.BlockSpec((images_per_step, C, HW), lambda g, wb_ref: (g, 0, 0)),
            ],
            out_specs=pl.BlockSpec((images_per_step, 1, HW), lambda g, wb_ref: (g, 0, 0)),
        ),
        compiler_params=pltpu.CompilerParams(dimension_semantics=("parallel",)),
        cost_estimate=pl.CostEstimate(
            flops=2 * 9 * C * HW * N,
            bytes_accessed=(x_nchw.size + N * HW) * x_nchw.dtype.itemsize
            + (1 + 9 * C) * 4,
            transcendentals=0,
        ),
    )(wb, x_flat)

    # (N, 1, H*W) -> (N, 1, H, W): pure row-major reshape, no data movement.
    return out_flat.reshape(N, 1, H, W)


if __name__ == "__main__":
    # Small shapes consistent with the module: batch=2, in_c=4, spatial=16x16.
    N, C, H, W = 2, 4, 16, 16

    key = jax.random.PRNGKey(0)
    kx, kw, kb = jax.random.split(key, 3)

    x = jax.random.normal(kx, (N, C, H, W), dtype=jnp.float32)

    # Deterministic Conv2d-style init: U(-bound, bound), bound = 1/sqrt(fan_in).
    fan_in = C * 3 * 3
    bound = 1.0 / (fan_in ** 0.5)
    weight = jax.random.uniform(kw, (1, C, 3, 3), jnp.float32, -bound, bound)
    bias = jax.random.uniform(kb, (1,), jnp.float32, -bound, bound)

    out = multimodal_regression_forward(x, weight, bias)
    out = jax.block_until_ready(out)

    # Cross-check against XLA's conv (same semantics as nn.Conv2d, padding=1).
    ref = jax.lax.conv_general_dilated(
        x, weight, window_strides=(1, 1), padding=((1, 1), (1, 1)),
        dimension_numbers=("NCHW", "OIHW", "NCHW"),
    ) + bias.reshape(1, 1, 1, 1)

    assert out.shape == (N, 1, H, W)
    assert jnp.allclose(out, ref, rtol=1e-5, atol=1e-5)
    print("KERNEL_OK")
</pallas_src>

<mosaic_0001>
module attributes {stable_mosaic.version = 11 : i64} {
  func.func @_conv3x3_kernel(%arg0: i32, %arg1: memref<37xf32, #tpu.memory_space<smem>>, %arg2: memref<2x4x256xf32, #tpu.memory_space<vmem>>, %arg3: memref<2x1x256xf32, #tpu.memory_space<vmem>>) attributes {dimension_semantics = [#tpu.dimension_semantics<parallel>], iteration_bounds = array<i64: 1>, scalar_prefetch = 1 : i64, scratch_operands = 0 : i64, tpu.core_type = #tpu.core_type<tc>, window_params = [{transform_indices = @transform_0, window_bounds = array<i64: 2, 4, 256>}, {transform_indices = @transform_1, window_bounds = array<i64: 2, 1, 256>}]} {
    %c0 = arith.constant 0 : index
    %0 = memref.load %arg1[%c0] : memref<37xf32, #tpu.memory_space<smem>>
    %c1 = arith.constant 1 : index
    %1 = memref.load %arg1[%c1] : memref<37xf32, #tpu.memory_space<smem>>
    %c2 = arith.constant 2 : index
    %2 = memref.load %arg1[%c2] : memref<37xf32, #tpu.memory_space<smem>>
    %c3 = arith.constant 3 : index
    %3 = memref.load %arg1[%c3] : memref<37xf32, #tpu.memory_space<smem>>
    %c4 = arith.constant 4 : index
    %4 = memref.load %arg1[%c4] : memref<37xf32, #tpu.memory_space<smem>>
    %c5 = arith.constant 5 : index
    %5 = memref.load %arg1[%c5] : memref<37xf32, #tpu.memory_space<smem>>
    %c6 = arith.constant 6 : index
    %6 = memref.load %arg1[%c6] : memref<37xf32, #tpu.memory_space<smem>>
    %c7 = arith.constant 7 : index
    %7 = memref.load %arg1[%c7] : memref<37xf32, #tpu.memory_space<smem>>
    %c8 = arith.constant 8 : index
    %8 = memref.load %arg1[%c8] : memref<37xf32, #tpu.memory_space<smem>>
    %c9 = arith.constant 9 : index
    %9 = memref.load %arg1[%c9] : memref<37xf32, #tpu.memory_space<smem>>
    %c10 = arith.constant 10 : index
    %10 = memref.load %arg1[%c10] : memref<37xf32, #tpu.memory_space<smem>>
    %c11 = arith.constant 11 : index
    %11 = memref.load %arg1[%c11] : memref<37xf32, #tpu.memory_space<smem>>
    %c12 = arith.constant 12 : index
    %12 = memref.load %arg1[%c12] : memref<37xf32, #tpu.memory_space<smem>>
    %c13 = arith.constant 13 : index
    %13 = memref.load %arg1[%c13] : memref<37xf32, #tpu.memory_space<smem>>
    %c14 = arith.constant 14 : index
    %14 = memref.load %arg1[%c14] : memref<37xf32, #tpu.memory_space<smem>>
    %c15 = arith.constant 15 : index
    %15 = memref.load %arg1[%c15] : memref<37xf32, #tpu.memory_space<smem>>
    %c16 = arith.constant 16 : index
    %16 = memref.load %arg1[%c16] : memref<37xf32, #tpu.memory_space<smem>>
    %c17 = arith.constant 17 : index
    %17 = memref.load %arg1[%c17] : memref<37xf32, #tpu.memory_space<smem>>
    %c18 = arith.constant 18 : index
    %18 = memref.load %arg1[%c18] : memref<37xf32, #tpu.memory_space<smem>>
    %c19 = arith.constant 19 : index
    %19 = memref.load %arg1[%c19] : memref<37xf32, #tpu.memory_space<smem>>
    %c20 = arith.constant 20 : index
    %20 = memref.load %arg1[%c20] : memref<37xf32, #tpu.memory_space<smem>>
    %c21 = arith.constant 21 : index
    %21 = memref.load %arg1[%c21] : memref<37xf32, #tpu.memory_space<smem>>
    %c22 = arith.constant 22 : index
    %22 = memref.load %arg1[%c22] : memref<37xf32, #tpu.memory_space<smem>>
    %c23 = arith.constant 23 : index
    %23 = memref.load %arg1[%c23] : memref<37xf32, #tpu.memory_space<smem>>
    %c24 = arith.constant 24 : index
    %24 = memref.load %arg1[%c24] : memref<37xf32, #tpu.memory_space<smem>>
    %c25 = arith.constant 25 : index
    %25 = memref.load %arg1[%c25] : memref<37xf32, #tpu.memory_space<smem>>
    %c26 = arith.constant 26 : index
    %26 = memref.load %arg1[%c26] : memref<37xf32, #tpu.memory_space<smem>>
    %c27 = arith.constant 27 : index
    %27 = memref.load %arg1[%c27] : memref<37xf32, #tpu.memory_space<smem>>
    %c28 = arith.constant 28 : index
    %28 = memref.load %arg1[%c28] : memref<37xf32, #tpu.memory_space<smem>>
    %c29 = arith.constant 29 : index
    %29 = memref.load %arg1[%c29] : memref<37xf32, #tpu.memory_space<smem>>
    %c30 = arith.constant 30 : index
    %30 = memref.load %arg1[%c30] : memref<37xf32, #tpu.memory_space<smem>>
    %c31 = arith.constant 31 : index
    %31 = memref.load %arg1[%c31] : memref<37xf32, #tpu.memory_space<smem>>
    %c32 = arith.constant 32 : index
    %32 = memref.load %arg1[%c32] : memref<37xf32, #tpu.memory_space<smem>>
    %c33 = arith.constant 33 : index
    %33 = memref.load %arg1[%c33] : memref<37xf32, #tpu.memory_space<smem>>
    %c34 = arith.constant 34 : index
    %34 = memref.load %arg1[%c34] : memref<37xf32, #tpu.memory_space<smem>>
    %c35 = arith.constant 35 : index
    %35 = memref.load %arg1[%c35] : memref<37xf32, #tpu.memory_space<smem>>
    %c36 = arith.constant 36 : index
    %36 = memref.load %arg1[%c36] : memref<37xf32, #tpu.memory_space<smem>>
    %37 = tpu.iota {dimensions = array<i32: 1>} : vector<2x256xi32>
    %c16_i32 = arith.constant 16 : i32
    %c0_i32 = arith.constant 0 : i32
    %38 = arith.cmpi eq, %c16_i32, %c0_i32 : i32
    %c1_i32 = arith.constant 1 : i32
    %39 = arith.select %38, %c1_i32, %c16_i32 : i32
    %40 = vector.broadcast %39 : i32 to vector<2x256xi32>
    %41 = arith.remsi %37, %40 : vector<2x256xi32>
    %c0_i32_0 = arith.constant 0 : i32
    %42 = vector.broadcast %c0_i32_0 : i32 to vector<2x256xi32>
    %43 = arith.cmpi ne, %41, %42 : vector<2x256xi32>
    %c0_i32_1 = arith.constant 0 : i32
    %44 = vector.broadcast %c0_i32_1 : i32 to vector<2x256xi32>
    %45 = arith.cmpi slt, %41, %44 : vector<2x256xi32>
    %c0_i32_2 = arith.constant 0 : i32
    %46 = arith.cmpi slt, %39, %c0_i32_2 : i32
    %47 = vector.broadcast %46 : i1 to vector<2x256xi1>
    %48 = vector.broadcast %47 : vector<2x256xi1> to vector<2x256xi1>
    %49 = arith.xori %45, %48 : vector<2x256xi1>
    %50 = arith.andi %49, %43 : vector<2x256xi1>
    %51 = vector.broadcast %39 : i32 to vector<2x256xi32>
    %52 = arith.addi %41, %51 : vector<2x256xi32>
    %53 = arith.select %50, %52, %41 : vector<2x256xi1>, vector<2x256xi32>
    %c0_i32_3 = arith.constant 0 : i32
    %54 = vector.broadcast %c0_i32_3 : i32 to vector<2x256xi32>
    %55 = arith.cmpi sgt, %53, %54 : vector<2x256xi32>
    %c15_i32 = arith.constant 15 : i32
    %56 = vector.broadcast %c15_i32 : i32 to vector<2x256xi32>
    %57 = arith.cmpi slt, %53, %56 : vector<2x256xi32>
    %c16_i32_4 = arith.constant 16 : i32
    %58 = vector.broadcast %c16_i32_4 : i32 to vector<2x256xi32>
    %59 = arith.cmpi sge, %37, %58 : vector<2x256xi32>
    %c240_i32 = arith.constant 240 : i32
    %60 = vector.broadcast %c240_i32 : i32 to vector<2x256xi32>
    %61 = arith.cmpi slt, %37, %60 : vector<2x256xi32>
    %cst = arith.constant 0.000000e+00 : f32
    %62 = vector.broadcast %cst : f32 to vector<2x256xf32>
    %c0_5 = arith.constant 0 : index
    %c0_6 = arith.constant 0 : index
    %c0_7 = arith.constant 0 : index
    %63 = vector.load %arg2[%c0_5, %c0_6, %c0_7] : memref<2x4x256xf32, #tpu.memory_space<vmem>>, vector<2x1x256xf32>
    %64 = vector.shape_cast %63 : vector<2x1x256xf32> to vector<2x256xf32>
    %c1_i32_8 = arith.constant 1 : i32
    %65 = tpu.dynamic_rotate %64 by %c1_i32_8 dim 1 : vector<2x256xf32>, i32 -> vector<2x256xf32>
    %66 = arith.select %55, %65, %62 : vector<2x256xi1>, vector<2x256xf32>
    %c255_i32 = arith.constant 255 : i32
    %67 = tpu.dynamic_rotate %64 by %c255_i32 dim 1 : vector<2x256xf32>, i32 -> vector<2x256xf32>
    %68 = arith.select %57, %67, %62 : vector<2x256xi1>, vector<2x256xf32>
    %c0_9 = arith.constant 0 : index
    %c1_10 = arith.constant 1 : index
    %c0_11 = arith.constant 0 : index
    %69 = vector.load %arg2[%c0_9, %c1_10, %c0_11] : memref<2x4x256xf32, #tpu.memory_space<vmem>>, vector<2x1x256xf32>
    %70 = vector.shape_cast %69 : vector<2x1x256xf32> to vector<2x256xf32>
    %c1_i32_12 = arith.constant 1 : i32
    %71 = tpu.dynamic_rotate %70 by %c1_i32_12 dim 1 : vector<2x256xf32>, i32 -> vector<2x256xf32>
    %72 = arith.select %55, %71, %62 : vector<2x256xi1>, vector<2x256xf32>
    %c255_i32_13 = arith.constant 255 : i32
    %73 = tpu.dynamic_rotate %70 by %c255_i32_13 dim 1 : vector<2x256xf32>, i32 -> vector<2x256xf32>
    %74 = arith.select %57, %73, %62 : vector<2x256xi1>, vector<2x256xf32>
    %c0_14 = arith.constant 0 : index
    %c2_15 = arith.constant 2 : index
    %c0_16 = arith.constant 0 : index
    %75 = vector.load %arg2[%c0_14, %c2_15, %c0_16] : memref<2x4x256xf32, #tpu.memory_space<vmem>>, vector<2x1x256xf32>
    %76 = vector.shape_cast %75 : vector<2x1x256xf32> to vector<2x256xf32>
    %c1_i32_17 = arith.constant 1 : i32
    %77 = tpu.dynamic_rotate %76 by %c1_i32_17 dim 1 : vector<2x256xf32>, i32 -> vector<2x256xf32>
    %78 = arith.select %55, %77, %62 : vector<2x256xi1>, vector<2x256xf32>
    %c255_i32_18 = arith.constant 255 : i32
    %79 = tpu.dynamic_rotate %76 by %c255_i32_18 dim 1 : vector<2x256xf32>, i32 -> vector<2x256xf32>
    %80 = arith.select %57, %79, %62 : vector<2x256xi1>, vector<2x256xf32>
    %c0_19 = arith.constant 0 : index
    %c3_20 = arith.constant 3 : index
    %c0_21 = arith.constant 0 : index
    %81 = vector.load %arg2[%c0_19, %c3_20, %c0_21] : memref<2x4x256xf32, #tpu.memory_space<vmem>>, vector<2x1x256xf32>
    %82 = vector.shape_cast %81 : vector<2x1x256xf32> to vector<2x256xf32>
    %c1_i32_22 = arith.constant 1 : i32
    %83 = tpu.dynamic_rotate %82 by %c1_i32_22 dim 1 : vector<2x256xf32>, i32 -> vector<2x256xf32>
    %84 = arith.select %55, %83, %62 : vector<2x256xi1>, vector<2x256xf32>
    %c255_i32_23 = arith.constant 255 : i32
    %85 = tpu.dynamic_rotate %82 by %c255_i32_23 dim 1 : vector<2x256xf32>, i32 -> vector<2x256xf32>
    %86 = arith.select %57, %85, %62 : vector<2x256xi1>, vector<2x256xf32>
    %87 = vector.broadcast %0 : f32 to vector<2x256xf32>
    %88 = vector.broadcast %1 : f32 to vector<2x256xf32>
    %89 = arith.mulf %66, %88 : vector<2x256xf32>
    %90 = arith.addf %62, %89 : vector<2x256xf32>
    %91 = vector.broadcast %2 : f32 to vector<2x256xf32>
    %92 = arith.mulf %64, %91 : vector<2x256xf32>
    %93 = arith.addf %90, %92 : vector<2x256xf32>
    %94 = vector.broadcast %3 : f32 to vector<2x256xf32>
    %95 = arith.mulf %68, %94 : vector<2x256xf32>
    %96 = arith.addf %93, %95 : vector<2x256xf32>
    %97 = vector.broadcast %10 : f32 to vector<2x256xf32>
    %98 = arith.mulf %72, %97 : vector<2x256xf32>
    %99 = arith.addf %96, %98 : vector<2x256xf32>
    %100 = vector.broadcast %11 : f32 to vector<2x256xf32>
    %101 = arith.mulf %70, %100 : vector<2x256xf32>
    %102 = arith.addf %99, %101 : vector<2x256xf32>
    %103 = vector.broadcast %12 : f32 to vector<2x256xf32>
    %104 = arith.mulf %74, %103 : vector<2x256xf32>
    %105 = arith.addf %102, %104 : vector<2x256xf32>
    %106 = vector.broadcast %19 : f32 to vector<2x256xf32>
    %107 = arith.mulf %78, %106 : vector<2x256xf32>
    %108 = arith.addf %105, %107 : vector<2x256xf32>
    %109 = vector.broadcast %20 : f32 to vector<2x256xf32>
    %110 = arith.mulf %76, %109 : vector<2x256xf32>
    %111 = arith.addf %108, %110 : vector<2x256xf32>
    %112 = vector.broadcast %21 : f32 to vector<2x256xf32>
    %113 = arith.mulf %80, %112 : vector<2x256xf32>
    %114 = arith.addf %111, %113 : vector<2x256xf32>
    %115 = vector.broadcast %28 : f32 to vector<2x256xf32>
    %116 = arith.mulf %84, %115 : vector<2x256xf32>
    %117 = arith.addf %114, %116 : vector<2x256xf32>
    %118 = vector.broadcast %29 : f32 to vector<2x256xf32>
    %119 = arith.mulf %82, %118 : vector<2x256xf32>
    %120 = arith.addf %117, %119 : vector<2x256xf32>
    %121 = vector.broadcast %30 : f32 to vector<2x256xf32>
    %122 = arith.mulf %86, %121 : vector<2x256xf32>
    %123 = arith.addf %120, %122 : vector<2x256xf32>
    %c16_i32_24 = arith.constant 16 : i32
    %124 = tpu.dynamic_rotate %123 by %c16_i32_24 dim 1 : vector<2x256xf32>, i32 -> vector<2x256xf32>
    %125 = arith.select %59, %124, %62 : vector<2x256xi1>, vector<2x256xf32>
    %126 = arith.addf %87, %125 : vector<2x256xf32>
    %127 = vector.broadcast %4 : f32 to vector<2x256xf32>
    %128 = arith.mulf %66, %127 : vector<2x256xf32>
    %129 = arith.addf %62, %128 : vector<2x256xf32>
    %130 = vector.broadcast %5 : f32 to vector<2x256xf32>
    %131 = arith.mulf %64, %130 : vector<2x256xf32>
    %132 = arith.addf %129, %131 : vector<2x256xf32>
    %133 = vector.broadcast %6 : f32 to vector<2x256xf32>
    %134 = arith.mulf %68, %133 : vector<2x256xf32>
    %135 = arith.addf %132, %134 : vector<2x256xf32>
    %136 = vector.broadcast %13 : f32 to vector<2x256xf32>
    %137 = arith.mulf %72, %136 : vector<2x256xf32>
    %138 = arith.addf %135, %137 : vector<2x256xf32>
    %139 = vector.broadcast %14 : f32 to vector<2x256xf32>
    %140 = arith.mulf %70, %139 : vector<2x256xf32>
    %141 = arith.addf %138, %140 : vector<2x256xf32>
    %142 = vector.broadcast %15 : f32 to vector<2x256xf32>
    %143 = arith.mulf %74, %142 : vector<2x256xf32>
    %144 = arith.addf %141, %143 : vector<2x256xf32>
    %145 = vector.broadcast %22 : f32 to vector<2x256xf32>
    %146 = arith.mulf %78, %145 : vector<2x256xf32>
    %147 = arith.addf %144, %146 : vector<2x256xf32>
    %148 = vector.broadcast %23 : f32 to vector<2x256xf32>
    %149 = arith.mulf %76, %148 : vector<2x256xf32>
    %150 = arith.addf %147, %149 : vector<2x256xf32>
    %151 = vector.broadcast %24 : f32 to vector<2x256xf32>
    %152 = arith.mulf %80, %151 : vector<2x256xf32>
    %153 = arith.addf %150, %152 : vector<2x256xf32>
    %154 = vector.broadcast %31 : f32 to vector<2x256xf32>
    %155 = arith.mulf %84, %154 : vector<2x256xf32>
    %156 = arith.addf %153, %155 : vector<2x256xf32>
    %157 = vector.broadcast %32 : f32 to vector<2x256xf32>
    %158 = arith.mulf %82, %157 : vector<2x256xf32>
    %159 = arith.addf %156, %158 : vector<2x256xf32>
    %160 = vector.broadcast %33 : f32 to vector<2x256xf32>
    %161 = arith.mulf %86, %160 : vector<2x256xf32>
    %162 = arith.addf %159, %161 : vector<2x256xf32>
    %163 = arith.addf %126, %162 : vector<2x256xf32>
    %164 = vector.broadcast %7 : f32 to vector<2x256xf32>
    %165 = arith.mulf %66, %164 : vector<2x256xf32>
    %166 = arith.addf %62, %165 : vector<2x256xf32>
    %167 = vector.broadcast %8 : f32 to vector<2x256xf32>
    %168 = arith.mulf %64, %167 : vector<2x256xf32>
    %169 = arith.addf %166, %168 : vector<2x256xf32>
    %170 = vector.broadcast %9 : f32 to vector<2x256xf32>
    %171 = arith.mulf %68, %170 : vector<2x256xf32>
    %172 = arith.addf %169, %171 : vector<2x256xf32>
    %173 = vector.broadcast %16 : f32 to vector<2x256xf32>
    %174 = arith.mulf %72, %173 : vector<2x256xf32>
    %175 = arith.addf %172, %174 : vector<2x256xf32>
    %176 = vector.broadcast %17 : f32 to vector<2x256xf32>
    %177 = arith.mulf %70, %176 : vector<2x256xf32>
    %178 = arith.addf %175, %177 : vector<2x256xf32>
    %179 = vector.broadcast %18 : f32 to vector<2x256xf32>
    %180 = arith.mulf %74, %179 : vector<2x256xf32>
    %181 = arith.addf %178, %180 : vector<2x256xf32>
    %182 = vector.broadcast %25 : f32 to vector<2x256xf32>
    %183 = arith.mulf %78, %182 : vector<2x256xf32>
    %184 = arith.addf %181, %183 : vector<2x256xf32>
    %185 = vector.broadcast %26 : f32 to vector<2x256xf32>
    %186 = arith.mulf %76, %185 : vector<2x256xf32>
    %187 = arith.addf %184, %186 : vector<2x256xf32>
    %188 = vector.broadcast %27 : f32 to vector<2x256xf32>
    %189 = arith.mulf %80, %188 : vector<2x256xf32>
    %190 = arith.addf %187, %189 : vector<2x256xf32>
    %191 = vector.broadcast %34 : f32 to vector<2x256xf32>
    %192 = arith.mulf %84, %191 : vector<2x256xf32>
    %193 = arith.addf %190, %192 : vector<2x256xf32>
    %194 = vector.broadcast %35 : f32 to vector<2x256xf32>
    %195 = arith.mulf %82, %194 : vector<2x256xf32>
    %196 = arith.addf %193, %195 : vector<2x256xf32>
    %197 = vector.broadcast %36 : f32 to vector<2x256xf32>
    %198 = arith.mulf %86, %197 : vector<2x256xf32>
    %199 = arith.addf %196, %198 : vector<2x256xf32>
    %c240_i32_25 = arith.constant 240 : i32
    %200 = tpu.dynamic_rotate %199 by %c240_i32_25 dim 1 : vector<2x256xf32>, i32 -> vector<2x256xf32>
    %201 = arith.select %61, %200, %62 : vector<2x256xi1>, vector<2x256xf32>
    %202 = arith.addf %163, %201 : vector<2x256xf32>
    %c0_26 = arith.constant 0 : index
    %c0_27 = arith.constant 0 : index
    %c0_28 = arith.constant 0 : index
    %203 = vector.load %arg3[%c0_26, %c0_27, %c0_28] : memref<2x1x256xf32, #tpu.memory_space<vmem>>, vector<2x1x256xf32>
    %204 = vector.shape_cast %203 : vector<2x1x256xf32> to vector<2x256xf32>
    %205 = vector.shape_cast %202 : vector<2x256xf32> to vector<2x1x256xf32>
    tpu.vector_store %arg3[%c0_26, %c0_27, %c0_28], %205 {strides = array<i32>} : memref<2x1x256xf32, #tpu.memory_space<vmem>>, vector<2x1x256xf32>,
    return
  }
  func.func @transform_0(%arg0: i32, %arg1: memref<37xf32, #tpu.memory_space<smem>>) -> (i32, i32, i32) {
    %c0_i32 = arith.constant 0 : i32
    %c0_i32_0 = arith.constant 0 : i32
    %c0_i32_1 = arith.constant 0 : i32
    return %arg0, %c0_i32, %c0_i32_0 : i32, i32, i32
  }
  func.func @transform_1(%arg0: i32, %arg1: memref<37xf32, #tpu.memory_space<smem>>) -> (i32, i32, i32) {
    %c0_i32 = arith.constant 0 : i32
    %c0_i32_0 = arith.constant 0 : i32
    %c0_i32_1 = arith.constant 0 : i32
    return %arg0, %c0_i32, %c0_i32_0 : i32, i32, i32
  }
}

</mosaic_0001>

<bundles_post_ra>
// kernel: tpu_custom_call.1
= control target key start
LH: loop header
LB: loop body
LE: loop exit
PB: predicated region body
PF: predicated region fallthrough
CT: control target
= control target key end

     0   :  { %s712_s12 = smov [#allocation3]   ;;  %s1088_s0 = inlined_call_operand.hbm [shape: f32[37], index: 0, kind: input, shape index: {}]   ;;  %s1089_s1 = inlined_call_operand.hbm [shape: f32[2,4,256], index: 1, kind: input, shape index: {}]   ;;  %s1090_s2 = inlined_call_operand.hbm [shape: f32[2,1,256], index: 2, kind: output, shape index: {}]  }
   0x1   :  { %s8_s11 = sshll.u32 %s1088_s0, 4  ;;  %s9_s11 = int_to_ptr.hbm [resolvable:$true] %s8_s11 }
   0x2   :  { %11 = dma.hbm_to_smem %s9_s11, 16, %s712_s12, [#allocation2] }
   0x3   :  { %706 = dma.done.wait [#allocation2], 16 }
   0x4   :  { %707 = vsyncadd [#allocation2], 4294967280 }
   0x5   :  { %14 = sfence }
   0x6   :  { %15 = vsyncpa [#allocation5], 0 }
   0x7   :  { %16 = vsyncpa [#allocation6], 0  ;;  %s21_s15 = sshll.u32 %s1089_s1, 4  ;;  %s713_s16 = smov [#allocation4]   ;;  %s22_s15 = int_to_ptr.hbm [resolvable:$true] %s21_s15 }
   0x8   :  { %s23_s17 = sshll.u32 %s713_s16, 4  ;;  %s714_s18 = smov 128   ;;  %s24_s17 = int_to_ptr.vmem [resolvable:$true] %s23_s17 }
   0x9   :  { %s715_s19 = smov 8  }
   0xa   :  { %29 = dma.hbm_to_vmem [thread:$0]  %s22_s15, 256, %s24_s17, [#allocation5], %s714_s18, %s714_s18, %s715_s19  }
   0xb   :  { %708 = dma.done.wait [#allocation5], 256  }
   0xc   :  { %709 = vsyncadd [#allocation5], 4294967040  ;;  %v744_v0 = vld [vmem:[#allocation4] ss:$4 sm:$0x3]  ;;  %s716_s0 = smov 1   ;;  %v71_v50 = vlaneseq }
   0xd   :  { %v746_v1 = vld [vmem:[#allocation4 + $0x8] ss:$4 sm:$0x3]  ;;  %111 = vst [vmem:[#allocation1] ss:$9 sm:$0xff] %v744_v0  ;;  %s717_s1 = smov 127  }
   0xe   :  { %113 = vst [vmem:[#allocation1 + $0x1] ss:$9 sm:$0xff] %v746_v1  ;;  %v753_v4 = vld [vmem:[#allocation4 + $0x1] ss:$4 sm:$0x3]  ;;  %s600_s20 = sld [smem:[#allocation3 + $0x2]] }
   0xf   :  { %v755_v5 = vld [vmem:[#allocation4 + $0x9] ss:$4 sm:$0x3]  ;;  %v765_v10 = vld [vmem:[#allocation4 + $0x2] ss:$4 sm:$0x3] }
  0x10   :  { %v767_v11 = vld [vmem:[#allocation4 + $0xa] ss:$4 sm:$0x3]  ;;  %v778_v16 = vld [vmem:[#allocation4 + $0x3] ss:$4 sm:$0x3] }
  0x11   :  { %v780_v17 = vld [vmem:[#allocation4 + $0xb] ss:$4 sm:$0x3]  ;;  %s609_s21 = sld [smem:[#allocation3 + $0xb]]  ;;  %v821_v53 = vand.u32 127, %v71_v50  ;;  %vm567_vm10 = vcmask 1040384  }
  0x12   :  { %s618_s22 = sld [smem:[#allocation3 + $0x14]]  ;;  %vm569_vm11 = vcmask 1041409   ;;  %vm576_vm12 = vcmp.lt.s32.totalorder %v71_v50, 256 }
  0x13   :  { %s627_s23 = sld [smem:[#allocation3 + $0x1d]]  ;;  %v825_v56 = vadd.s32 128, %v821_v53  ;;  %v78_v62 = vand.u32 15, %v821_v53  ;;  %vm122_vm0 = vcmp.lt.s32.totalorder %v821_v53, 1  ;;  %vm138_vm3 = vcmp.lt.s32.totalorder %v821_v53, 127 }
  0x14   :  { %v257_v22 = vstv %s600_s20  ;;  %s603_s24 = sld [smem:[#allocation3 + $0x5]]  ;;  %vm352_vm6 = vcmp.lt.s32.totalorder %v821_v53, 16  ;;  %vm102_vm7 = vcmp.ge.s32.totalorder %v821_v53, 16  ;;  %vm557_vm8 = vcmp.lt.s32.totalorder %v821_v53, 112 }
  0x15   :  { %v114_v2 = vld [vmem:[#allocation1] sm:$0xff]  ;;  %v115_v3 = vld [vmem:[#allocation1 + $0x9] sm:$0xff]  ;;  %v258_v23 = vmul.f32 %v257_v22, %v744_v0  ;;  %v259_v24 = vmul.f32 %v257_v22, %v746_v1  ;;  %s612_s25 = sld [smem:[#allocation3 + $0xe]]  ;;  %v85_v63 = vand.u32 15, %v825_v56  ;;  %vm837_vm1 = vcmp.gt.s32.totalorder %v78_v62, 0 }
  0x16   :  { %118 = vrot.lane.b32.xlu0 %v114_v2, %s716_s0  ;;  %127 = vst [vmem:[#allocation1] ss:$9 sm:$0xff] %v744_v0  ;;  %s621_s26 = sld [smem:[#allocation3 + $0x17]]  ;;  %vm878_vm4 = vcmp.lt.s32.totalorder %v78_v62, 15  ;;  %vm105_vm9 = vcmp.lt.s32.totalorder %v825_v56, 240 }
  0x17   :  { %129 = vst [vmem:[#allocation1 + $0x1] ss:$9 sm:$0xff] %v746_v1  ;;  %v281_v27 = vstv %s609_s21  ;;  %s630_s27 = sld [smem:[#allocation3 + $0x20]]  ;;  %vm841_vm2 = vcmp.gt.s32.totalorder %v85_v63, 0  ;;  %vm882_vm5 = vcmp.lt.s32.totalorder %v85_v63, 15 }
  0x18   :  { %v282_v28 = vmul.f32 %v281_v27, %v753_v4  ;;  %v283_v29 = vmul.f32 %v281_v27, %v755_v5  ;;  %v305_v32 = vstv %s618_s22  ;;  %s602_s28 = sld [smem:[#allocation3 + $0x4]] }
  0x19   :  { %v306_v33 = vmul.f32 %v305_v32, %v765_v10  ;;  %v307_v34 = vmul.f32 %v305_v32, %v767_v11  ;;  %v329_v37 = vstv %s627_s23  ;;  %s834_s29 = sld [smem:[#allocation3 + $0x8]] }
  0x1a   :  { %v330_v38 = vmul.f32 %v329_v37, %v778_v16  ;;  %v331_v39 = vmul.f32 %v329_v37, %v780_v17  ;;  %v364_v42 = vstv %s603_s24  ;;  %s846_s30 = sld [smem:[#allocation3 + $0x6]] }
  0x1b   :  { %v365_v43 = vmul.f32 %v364_v42, %v744_v0  ;;  %v366_v44 = vmul.f32 %v364_v42, %v746_v1  ;;  %v388_v47 = vstv %s612_s25  ;;  %s853_s3 = sld [smem:[#allocation3 + $0xd]] }
  0x1c   :  { %v389_v48 = vmul.f32 %v388_v47, %v753_v4  ;;  %v390_v49 = vmul.f32 %v388_v47, %v755_v5  ;;  %v412_v54 = vstv %s621_s26  ;;  %s874_s4 = sld [smem:[#allocation3 + $0x11]]  ;;  %s718_s26 = smov 16  }
  0x1d   :  { %v413_v55 = vmul.f32 %v412_v54, %v765_v10  ;;  %v414_v57 = vmul.f32 %v412_v54, %v767_v11  ;;  %v436_v2 = vstv %s630_s27  ;;  %s886_s5 = sld [smem:[#allocation3 + $0x1]]  ;;  %s719_s27 = smov 112  }
  0x1e   :  { %v130_v6 = vld [vmem:[#allocation1] sm:$0xff]  ;;  %120 = vrot.lane.b32.xlu0 %v115_v3, %s716_s0  ;;  %v131_v7 = vld [vmem:[#allocation1 + $0x9] sm:$0xff]  ;;  %s911_s6 = sld [smem:[#allocation3 + $0xf]] }
  0x1f   :  { %134 = vrot.lane.b32.xlu1 %v130_v6, %s717_s1  ;;  %149 = vst [vmem:[#allocation1] ss:$9 sm:$0xff] %v753_v4  ;;  %s913_s7 = sld [smem:[#allocation3 + $0x1a]] }
  0x20   :  { %151 = vst [vmem:[#allocation1 + $0x1] ss:$9 sm:$0xff] %v755_v5  ;;  %s923_s8 = sld [smem:[#allocation3 + $0x7]] }
  0x21   :  { %s925_s9 = sld [smem:[#allocation3 + $0x3]] }
  0x22   :  { %v486_v62 = vstv %s874_s4  ;;  %s928_s10 = sld [smem:[#allocation3 + $0x9]] }
  0x23   :  { %s930_s11 = sld [smem:[#allocation3 + $0xa]] }
  0x24   :  { %s937_s12 = sld [smem:[#allocation3 + $0x10]] }
  0x25   :  { %s946_s13 = sld [smem:[#allocation3 + $0x16]] }
  0x26   :  { %s957_s14 = sld [smem:[#allocation3 + $0x23]] }
  0x27   :  { %136 = vrot.lane.b32.xlu1 %v131_v7, %s717_s1  ;;  %v152_v8 = vld [vmem:[#allocation1] sm:$0xff]  ;;  %v153_v9 = vld [vmem:[#allocation1 + $0x9] sm:$0xff]  ;;  %v437_v7 = vmul.f32 %v436_v2, %v778_v16  ;;  %s970_s15 = sld [smem:[#allocation3 + $0xc]] }
  0x28   :  { %164 = vst [vmem:[#allocation1] ss:$9 sm:$0xff] %v753_v4  ;;  %156 = vrot.lane.b32.xlu2 %v152_v8, %s716_s0  ;;  %s972_s16 = sld [smem:[#allocation3 + $0x12]] }
  0x29   :  { %166 = vst [vmem:[#allocation1 + $0x1] ss:$9 sm:$0xff] %v755_v5  ;;  %s978_s17 = sld [smem:[#allocation3 + $0x13]] }
  0x2a   :  { %s983_s18 = sld [smem:[#allocation3 + $0x18]] }
  0x2b   :  { %s993_s19 = sld [smem:[#allocation3 + $0x19]] }
  0x2c   :  { %s1014_s20 = sld [smem:[#allocation3 + $0x1c]] }
  0x2d   :  { %s1019_s21 = sld [smem:[#allocation3 + $0x1f]] }
  0x2e   :  { %s1025_s22 = sld [smem:[#allocation3 + $0x22]] }
  0x2f   :  { %s1046_s23 = sld [smem:[#allocation3 + $0x1e]] }
  0x30   :  { %v168_v12 = vld [vmem:[#allocation1 + $0x9] sm:$0xff]  ;;  %v167_v13 = vld [vmem:[#allocation1] sm:$0xff]  ;;  %158 = vrot.lane.b32.xlu2 %v153_v9, %s716_s0  ;;  %v359_v9 = vstv %s602_s28  ;;  %s1050_s24 = sld [smem:[#allocation3 + $0x21]] }
  0x31   :  { %173 = vrot.lane.b32.xlu1 %v168_v12, %s717_s1  ;;  %171 = vrot.lane.b32.xlu0 %v167_v13, %s717_s1  ;;  %185 = vst [vmem:[#allocation1] ss:$9 sm:$0xff] %v765_v10  ;;  %v438_v12 = vmul.f32 %v436_v2, %v780_v17  ;;  %s1057_s25 = sld [smem:[#allocation3 + $0x24]] }
  0x32   :  { %187 = vst [vmem:[#allocation1 + $0x1] ss:$9 sm:$0xff] %v767_v11  ;;  %s34_s28 = sld [smem:[#allocation3]] }
  0x39   :  { %v189_v14 = vld [vmem:[#allocation1 + $0x9] sm:$0xff]  ;;  %v188_v15 = vld [vmem:[#allocation1] sm:$0xff] }
  0x3a   :  { %194 = vrot.lane.b32.xlu0 %v189_v14, %s716_s0  ;;  %200 = vst [vmem:[#allocation1] ss:$9 sm:$0xff] %v765_v10  ;;  %192 = vrot.lane.b32.xlu2 %v188_v15, %s716_s0 }
  0x3b   :  { %202 = vst [vmem:[#allocation1 + $0x1] ss:$9 sm:$0xff] %v767_v11 }
  0x42   :  { %v203_v18 = vld [vmem:[#allocation1] sm:$0xff]  ;;  %v204_v19 = vld [vmem:[#allocation1 + $0x9] sm:$0xff] }
  0x43   :  { %207 = vrot.lane.b32.xlu1 %v203_v18, %s717_s1  ;;  %221 = vst [vmem:[#allocation1] ss:$9 sm:$0xff] %v778_v16  ;;  %209 = vrot.lane.b32.xlu2 %v204_v19, %s717_s1 }
  0x44   :  { %223 = vst [vmem:[#allocation1 + $0x1] ss:$9 sm:$0xff] %v780_v17 }
  0x4b   :  { %v225_v20 = vld [vmem:[#allocation1 + $0x9] sm:$0xff]  ;;  %v224_v21 = vld [vmem:[#allocation1] sm:$0xff] }
  0x4c   :  { %230 = vrot.lane.b32.xlu1 %v225_v20, %s716_s0  ;;  %228 = vrot.lane.b32.xlu0 %v224_v21, %s716_s0  ;;  %236 = vst [vmem:[#allocation1] ss:$9 sm:$0xff] %v778_v16  ;;  %s1005_s0 = sld [smem:[#allocation3 + $0x15]] }
  0x4d   :  { %238 = vst [vmem:[#allocation1 + $0x1] ss:$9 sm:$0xff] %v780_v17 }
  0x54   :  { %v240_v25 = vld [vmem:[#allocation1 + $0x9] sm:$0xff]  ;;  %v239_v26 = vld [vmem:[#allocation1] sm:$0xff] }
  0x55   :  { %245 = vrot.lane.b32.xlu0 %v240_v25, %s717_s1  ;;  %262 = vst [vmem:[#allocation1] ss:$9 sm:$0xff] %v258_v23  ;;  %243 = vrot.lane.b32.xlu2 %v239_v26, %s717_s1  ;;  %v462_v25 = vstv %s834_s29  ;;  %s1008_s1 = sld [smem:[#allocation3 + $0x1b]]  ;;  %s720_s29 = smov [#allocation7]  }
  0x56   :  { %264 = vst [vmem:[#allocation1 + $0x1] ss:$9 sm:$0xff] %v259_v24  ;;  %v463_v32 = vmul.f32 %v462_v25, %v744_v0  ;;  %v383_v0 = vstv %s853_s3 }
  0x5d   :  { %v796_v30 = vld [vmem:[#allocation1] sm:$0xff]  ;;  %v798_v31 = vld [vmem:[#allocation1 + $0x9] sm:$0xff] }
  0x5e   :  { %286 = vst [vmem:[#allocation1] ss:$9 sm:$0xff] %v282_v28 }
  0x5f   :  { %288 = vst [vmem:[#allocation1 + $0x1] ss:$9 sm:$0xff] %v283_v29 }
  0x66   :  { %v802_v35 = vld [vmem:[#allocation1] sm:$0xff]  ;;  %v804_v36 = vld [vmem:[#allocation1 + $0x9] sm:$0xff] }
  0x67   :  { %310 = vst [vmem:[#allocation1] ss:$9 sm:$0xff] %v306_v33 }
  0x68   :  { %312 = vst [vmem:[#allocation1 + $0x1] ss:$9 sm:$0xff] %v307_v34 }
  0x6f   :  { %v808_v40 = vld [vmem:[#allocation1] sm:$0xff]  ;;  %v810_v41 = vld [vmem:[#allocation1 + $0x9] sm:$0xff] }
  0x70   :  { %334 = vst [vmem:[#allocation1] ss:$9 sm:$0xff] %v330_v38  ;;  %v378_v38 = vstv %s846_s30  ;;  %s584_s30 = sshll.u32 %s720_s29, 4  ;;  %s585_s30 = int_to_ptr.vmem [resolvable:$true] %s584_s30 }
  0x71   :  { %336 = vst [vmem:[#allocation1 + $0x1] ss:$9 sm:$0xff] %v331_v39 }
  0x78   :  { %v814_v45 = vld [vmem:[#allocation1] sm:$0xff]  ;;  %v816_v46 = vld [vmem:[#allocation1 + $0x9] sm:$0xff] }
  0x79   :  { %369 = vst [vmem:[#allocation1] ss:$9 sm:$0xff] %v365_v43  ;;  %v464_v43 = vmul.f32 %v462_v25, %v746_v1 }
  0x7a   :  { %371 = vst [vmem:[#allocation1 + $0x1] ss:$9 sm:$0xff] %v366_v44 }
  0x81   :  { %v372_v51 = vld [vmem:[#allocation1] sm:$0xff]  ;;  %v373_v52 = vld [vmem:[#allocation1 + $0x9] sm:$0xff] }
  0x82   :  { %393 = vst [vmem:[#allocation1] ss:$9 sm:$0xff] %v389_v48  ;;  %v157_v59 = vpop.permute.xlu2 %156 }
  0x83   :  { %395 = vst [vmem:[#allocation1 + $0x1] ss:$9 sm:$0xff] %v390_v49 }
  0x88   :  { %v119_v58 = vpop.permute.xlu0 %118 }
  0x8a   :  { %v828_v60 = vld [vmem:[#allocation1] sm:$0xff]  ;;  %v830_v61 = vld [vmem:[#allocation1 + $0x9] sm:$0xff]  ;;  %v159_v24 = vpop.permute.xlu2 %158 }
  0x8b   :  { %417 = vst [vmem:[#allocation1] ss:$9 sm:$0xff] %v413_v55  ;;  %v160_v28 = vsel %vm122_vm0, %v157_v59, %v159_v24  ;;  %v161_v29 = vsel %vm122_vm0, %v159_v24, %v157_v59 }
  0x8c   :  { %419 = vst [vmem:[#allocation1 + $0x1] ss:$9 sm:$0xff] %v414_v57  ;;  %v891_v39 = vsel %vm837_vm1, %v161_v29, 0.0  ;;  %v895_v42 = vsel %vm841_vm2, %v160_v28, 0.0  ;;  %v271_v28 = vstv %s925_s9  ;;  %v510_v29 = vstv %s913_s7  ;;  %s722_s7 = smov 2  }
  0x8d   :  { %v384_v55 = vmul.f32 %v383_v0, %v891_v39  ;;  %v385_v57 = vmul.f32 %v383_v0, %v895_v42 }
  0x90   :  { %v121_v8 = vpop.permute.xlu0 %120 }
  0x91   :  { %v135_v13 = vpop.permute.xlu1 %134  ;;  %v123_v14 = vsel %vm122_vm0, %v119_v58, %v121_v8  ;;  %v124_v15 = vsel %vm122_vm0, %v121_v8, %v119_v58  ;;  %v487_v8 = vmul.f32 %v486_v62, %v753_v4 }
  0x92   :  { %v857_v18 = vsel %vm837_vm1, %v124_v15, 0.0  ;;  %v861_v19 = vsel %vm841_vm2, %v123_v14, 0.0 }
  0x93   :  { %v360_v20 = vmul.f32 %v359_v9, %v857_v18  ;;  %v361_v21 = vmul.f32 %v359_v9, %v861_v19  ;;  %v865_v22 = vld [vmem:[#allocation1] sm:$0xff]  ;;  %v867_v23 = vld [vmem:[#allocation1 + $0x9] sm:$0xff] }
  0x94   :  { %441 = vst [vmem:[#allocation1] ss:$9 sm:$0xff] %v437_v7  ;;  %v252_v7 = vstv %s886_s5  ;;  %s586_s5 = sshll.u32 %s1090_s2, 4  ;;  %s587_s5 = int_to_ptr.hbm [resolvable:$true] %s586_s5 }
  0x95   :  { %v376_v26 = vadd.f32 %v372_v51, %v360_v20  ;;  %v377_v27 = vadd.f32 %v373_v52, %v361_v21  ;;  %443 = vst [vmem:[#allocation1 + $0x1] ss:$9 sm:$0xff] %v438_v12  ;;  %v402_v20 = vstv %s911_s6  ;;  %v253_v21 = vmul.f32 %v252_v7, %v857_v18  ;;  %s721_s6 = smov 32  }
  0x96   :  { %v254_v24 = vmul.f32 %v252_v7, %v861_v19 }
  0x97   :  { %v269_v0 = vadd.f32 %v796_v30, %v253_v21  ;;  %v511_v30 = vmul.f32 %v510_v29, %v765_v10 }
  0x99   :  { %v137_v37 = vpop.permute.xlu1 %136 }
  0x9a   :  { %v139_v44 = vsel %vm138_vm3, %v135_v13, %v137_v37  ;;  %v140_v47 = vsel %vm138_vm3, %v137_v37, %v135_v13  ;;  %v488_v13 = vmul.f32 %v486_v62, %v755_v5  ;;  %v457_v5 = vstv %s923_s8 }
  0x9b   :  { %v905_v48 = vsel %vm878_vm4, %v139_v44, 0.0  ;;  %v909_v49 = vsel %vm882_vm5, %v140_v47, 0.0  ;;  %v458_v44 = vmul.f32 %v457_v5, %v857_v18  ;;  %v276_v47 = vstv %s930_s11 }
  0x9c   :  { %v915_v1 = vld [vmem:[#allocation1] sm:$0xff]  ;;  %v917_v51 = vld [vmem:[#allocation1 + $0x9] sm:$0xff]  ;;  %v379_v52 = vmul.f32 %v378_v38, %v905_v48  ;;  %v380_v54 = vmul.f32 %v378_v38, %v909_v49  ;;  %v277_v18 = vmul.f32 %v276_v47, %v891_v39 }
  0x9d   :  { %467 = vst [vmem:[#allocation1] ss:$9 sm:$0xff] %v463_v32  ;;  %v476_v32 = vstv %s928_s10 }
  0x9e   :  { %469 = vst [vmem:[#allocation1 + $0x1] ss:$9 sm:$0xff] %v464_v43  ;;  %v381_v58 = vadd.f32 %v379_v52, %v376_v26  ;;  %v382_v59 = vadd.f32 %v380_v54, %v377_v27  ;;  %v270_v43 = vadd.f32 %v798_v31, %v254_v24  ;;  %v272_v52 = vmul.f32 %v271_v28, %v905_v48 }
  0x9f   :  { %v273_v54 = vmul.f32 %v271_v28, %v909_v49  ;;  %v512_v31 = vmul.f32 %v510_v29, %v767_v11  ;;  %v295_v29 = vstv %s970_s15 }
  0xa0   :  { %v386_v63 = vadd.f32 %v384_v55, %v381_v58  ;;  %v387_v2 = vadd.f32 %v385_v57, %v382_v59  ;;  %v193_v58 = vpop.permute.xlu2 %192  ;;  %v481_v59 = vstv %s937_s12 }
  0xa2   :  { %v400_v9 = vadd.f32 %v828_v60, %v386_v63  ;;  %v401_v12 = vadd.f32 %v830_v61, %v387_v2  ;;  %v477_v63 = vmul.f32 %v476_v32, %v905_v48  ;;  %v278_v2 = vmul.f32 %v276_v47, %v895_v42 }
  0xa3   :  { %v174_v14 = vpop.permute.xlu1 %173  ;;  %v172_v15 = vpop.permute.xlu0 %171  ;;  %v500_v47 = vstv %s972_s16 }
  0xa4   :  { %v175_v4 = vsel %vm138_vm3, %v172_v15, %v174_v14  ;;  %v176_v60 = vsel %vm138_vm3, %v174_v14, %v172_v15  ;;  %v459_v14 = vmul.f32 %v457_v5, %v861_v19 }
  0xa5   :  { %v470_v61 = vld [vmem:[#allocation1] sm:$0xff]  ;;  %v471_v25 = vld [vmem:[#allocation1 + $0x9] sm:$0xff]  ;;  %v951_v26 = vsel %vm878_vm4, %v175_v4, 0.0  ;;  %v955_v27 = vsel %vm882_vm5, %v176_v60, 0.0  ;;  %v482_v4 = vmul.f32 %v481_v59, %v891_v39 }
  0xa6   :  { %491 = vst [vmem:[#allocation1] ss:$9 sm:$0xff] %v487_v8  ;;  %v403_v37 = vmul.f32 %v402_v20, %v951_v26  ;;  %v404_v38 = vmul.f32 %v402_v20, %v955_v27  ;;  %v474_v62 = vadd.f32 %v470_v61, %v458_v44  ;;  %v407_v8 = vstv %s946_s13 }
  0xa7   :  { %493 = vst [vmem:[#allocation1 + $0x1] ss:$9 sm:$0xff] %v488_v13  ;;  %v534_v13 = vstv %s957_s14  ;;  %v483_v44 = vmul.f32 %v481_v59, %v895_v42  ;;  %v296_v42 = vmul.f32 %v295_v29, %v951_v26 }
  0xa8   :  { %v405_v55 = vadd.f32 %v403_v37, %v400_v9  ;;  %v406_v57 = vadd.f32 %v404_v38, %v401_v12  ;;  %v274_v9 = vadd.f32 %v272_v52, %v269_v0  ;;  %v275_v12 = vadd.f32 %v273_v54, %v270_v43  ;;  %v210_v52 = vpop.permute.xlu2 %209 }
  0xa9   :  { %v479_v24 = vadd.f32 %v477_v63, %v474_v62  ;;  %v535_v5 = vmul.f32 %v534_v13, %v778_v16  ;;  %v475_v37 = vadd.f32 %v471_v25, %v459_v14  ;;  %v478_v38 = vmul.f32 %v476_v32, %v909_v49 }
  0xaa   :  { %v279_v61 = vadd.f32 %v277_v18, %v274_v9  ;;  %v280_v28 = vadd.f32 %v278_v2, %v275_v12  ;;  %v536_v39 = vmul.f32 %v534_v13, %v780_v17  ;;  %v300_v16 = vstv %s978_s17 }
  0xab   :  { %v484_v54 = vadd.f32 %v482_v4, %v479_v24  ;;  %v426_v49 = vstv %s983_s18  ;;  %v501_v18 = vmul.f32 %v500_v47, %v951_v26  ;;  %v319_v4 = vstv %s1005_s0 }
  0xac   :  { %v195_v7 = vpop.permute.xlu0 %194  ;;  %v293_v32 = vadd.f32 %v802_v35, %v279_v61  ;;  %v294_v17 = vadd.f32 %v804_v36, %v280_v28  ;;  %v502_v61 = vmul.f32 %v500_v47, %v955_v27  ;;  %v324_v28 = vstv %s1014_s20 }
  0xad   :  { %v196_v10 = vsel %vm122_vm0, %v193_v58, %v195_v7  ;;  %v197_v11 = vsel %vm122_vm0, %v195_v7, %v193_v58 }
  0xae   :  { %v494_v15 = vld [vmem:[#allocation1] sm:$0xff]  ;;  %v991_v48 = vld [vmem:[#allocation1 + $0x9] sm:$0xff]  ;;  %v198_v20 = vsel %vm837_vm1, %v197_v11, 0.0  ;;  %v999_v21 = vsel %vm841_vm2, %v196_v10, 0.0  ;;  %v298_v26 = vadd.f32 %v296_v42, %v293_v32 }
  0xaf   :  { %515 = vst [vmem:[#allocation1] ss:$9 sm:$0xff] %v511_v30  ;;  %v408_v19 = vmul.f32 %v407_v8, %v198_v20  ;;  %v409_v60 = vmul.f32 %v407_v8, %v999_v21  ;;  %v480_v30 = vadd.f32 %v478_v38, %v475_v37  ;;  %v301_v35 = vmul.f32 %v300_v16, %v198_v20 }
  0xb0   :  { %517 = vst [vmem:[#allocation1 + $0x1] ss:$9 sm:$0xff] %v512_v31  ;;  %v505_v31 = vstv %s993_s19  ;;  %v498_v2 = vadd.f32 %v494_v15, %v484_v54  ;;  %v302_v7 = vmul.f32 %v300_v16, %v999_v21  ;;  %v529_v37 = vstv %s1025_s22  ;;  %v244_v6 = vpop.permute.xlu2 %243 }
  0xb1   :  { %v410_v0 = vadd.f32 %v408_v19, %v405_v55  ;;  %v411_v43 = vadd.f32 %v409_v60, %v406_v57  ;;  %v297_v55 = vmul.f32 %v295_v29, %v955_v27  ;;  %v485_v10 = vadd.f32 %v483_v44, %v480_v30 }
  0xb2   :  { %v506_v11 = vmul.f32 %v505_v31, %v198_v20  ;;  %v303_v24 = vadd.f32 %v301_v35, %v298_v26  ;;  %v503_v19 = vadd.f32 %v501_v18, %v498_v2  ;;  %v524_v60 = vstv %s1008_s1 }
  0xb3   :  { %v424_v58 = vadd.f32 %v865_v22, %v410_v0  ;;  %v425_v25 = vadd.f32 %v867_v23, %v411_v43  ;;  %v299_v12 = vadd.f32 %v297_v55, %v294_v17  ;;  %v431_v29 = vstv %s1019_s21 }
  0xb4   :  { %v507_v38 = vmul.f32 %v505_v31, %v999_v21  ;;  %v508_v0 = vadd.f32 %v506_v11, %v503_v19  ;;  %v317_v44 = vadd.f32 %v808_v40, %v303_v24 }
  0xb5   :  { %v208_v57 = vpop.permute.xlu1 %207  ;;  %v304_v15 = vadd.f32 %v302_v7, %v299_v12 }
  0xb6   :  { %v211_v22 = vsel %vm138_vm3, %v208_v57, %v210_v52  ;;  %v212_v23 = vsel %vm138_vm3, %v210_v52, %v208_v57 }
  0xb7   :  { %v213_v36 = vsel %vm878_vm4, %v211_v22, 0.0  ;;  %v214_v59 = vsel %vm882_vm5, %v212_v23, 0.0  ;;  %v518_v62 = vld [vmem:[#allocation1] sm:$0xff]  ;;  %v1037_v63 = vld [vmem:[#allocation1 + $0x9] sm:$0xff] }
  0xb8   :  { %v427_v8 = vmul.f32 %v426_v49, %v213_v36  ;;  %v428_v9 = vmul.f32 %v426_v49, %v214_v59  ;;  %539 = vst [vmem:[#allocation1] ss:$9 sm:$0xff] %v535_v5  ;;  %v499_v5 = vadd.f32 %v991_v48, %v485_v10  ;;  %v320_v20 = vmul.f32 %v319_v4, %v213_v36 }
  0xb9   :  { %541 = vst [vmem:[#allocation1 + $0x1] ss:$9 sm:$0xff] %v536_v39  ;;  %v321_v16 = vmul.f32 %v319_v4, %v214_v59  ;;  %v318_v48 = vadd.f32 %v810_v41, %v304_v15  ;;  %v525_v21 = vmul.f32 %v524_v60, %v213_v36  ;;  %v522_v42 = vadd.f32 %v518_v62, %v508_v0 }
  0xba   :  { %v429_v13 = vadd.f32 %v427_v8, %v424_v58  ;;  %v430_v14 = vadd.f32 %v428_v9, %v425_v25  ;;  %v504_v32 = vadd.f32 %v502_v61, %v499_v5  ;;  %v322_v17 = vadd.f32 %v320_v20, %v317_v44 }
  0xbb   :  { %v323_v55 = vadd.f32 %v321_v16, %v318_v48  ;;  %v527_v3 = vadd.f32 %v525_v21, %v522_v42  ;;  %v343_v36 = vstv %s1046_s23  ;;  %v526_v2 = vmul.f32 %v524_v60, %v214_v59 }
  0xbc   :  { %v509_v31 = vadd.f32 %v507_v38, %v504_v32  ;;  %v450_v62 = vstv %s1050_s24  ;;  %v548_v9 = vstv %s1057_s25  ;;  %v251_v44 = vstv %s34_s28 }
  0xbe   :  { %v231_v43 = vpop.permute.xlu1 %230  ;;  %v229_v39 = vpop.permute.xlu0 %228  ;;  %v523_v26 = vadd.f32 %v1037_v63, %v509_v31 }
  0xbf   :  { %v232_v27 = vsel %vm122_vm0, %v229_v39, %v231_v43  ;;  %v233_v47 = vsel %vm122_vm0, %v231_v43, %v229_v39 }
  0xc0   :  { %v234_v52 = vsel %vm837_vm1, %v233_v47, 0.0  ;;  %v235_v54 = vsel %vm841_vm2, %v232_v27, 0.0  ;;  %v528_v15 = vadd.f32 %v526_v2, %v523_v26 }
  0xc1   :  { %v325_v58 = vmul.f32 %v324_v28, %v234_v52  ;;  %v326_v40 = vmul.f32 %v324_v28, %v235_v54  ;;  %v432_v25 = vmul.f32 %v431_v29, %v234_v52  ;;  %v433_v49 = vmul.f32 %v431_v29, %v235_v54 }
  0xc2   :  { %v530_v30 = vmul.f32 %v529_v37, %v234_v52  ;;  %v531_v12 = vmul.f32 %v529_v37, %v235_v54 }
  0xc3   :  { %v434_v57 = vadd.f32 %v432_v25, %v429_v13  ;;  %v435_v41 = vadd.f32 %v433_v49, %v430_v14  ;;  %v327_v22 = vadd.f32 %v325_v58, %v322_v17  ;;  %v328_v23 = vadd.f32 %v326_v40, %v323_v55  ;;  %v542_v13 = vld [vmem:[#allocation1] sm:$0xff] }
  0xc4   :  { %v532_v7 = vadd.f32 %v530_v30, %v527_v3  ;;  %v533_v38 = vadd.f32 %v531_v12, %v528_v15 }
  0xc5   :  { %v449_v18 = vadd.f32 %v917_v51, %v435_v41  ;;  %v448_v35 = vadd.f32 %v915_v1, %v434_v57  ;;  %v342_v59 = vadd.f32 %v816_v46, %v328_v23  ;;  %v341_v14 = vadd.f32 %v814_v45, %v327_v22  ;;  %v543_v46 = vld [vmem:[#allocation1 + $0x9] sm:$0xff] }
  0xc6   :  { %v546_v61 = vadd.f32 %v542_v13, %v532_v7  ;;  %v547_v34 = vadd.f32 %v543_v46, %v533_v38 }
  0xc7   :  { %v246_v8 = vpop.permute.xlu0 %245 }
  0xc8   :  { %v247_v10 = vsel %vm138_vm3, %v244_v6, %v246_v8  ;;  %v248_v11 = vsel %vm138_vm3, %v246_v8, %v244_v6 }
  0xc9   :  { %v249_v51 = vsel %vm878_vm4, %v247_v10, 0.0  ;;  %v250_v1 = vsel %vm882_vm5, %v248_v11, 0.0 }
  0xca   :  { %v344_v24 = vmul.f32 %v343_v36, %v249_v51  ;;  %v345_v63 = vmul.f32 %v343_v36, %v250_v1  ;;  %v451_v4 = vmul.f32 %v450_v62, %v249_v51  ;;  %v452_v19 = vmul.f32 %v450_v62, %v250_v1 }
  0xcb   :  { %v549_v60 = vmul.f32 %v548_v9, %v249_v51  ;;  %v550_v45 = vmul.f32 %v548_v9, %v250_v1 }
  0xcc   :  { %v347_v28 = vadd.f32 %v345_v63, %v342_v59  ;;  %v346_v29 = vadd.f32 %v344_v24, %v341_v14  ;;  %v454_v37 = vadd.f32 %v452_v19, %v449_v18  ;;  %v453_v5 = vadd.f32 %v451_v4, %v448_v35 }
  0xcd   :  { %v551_v33 = vadd.f32 %v549_v60, %v546_v61  ;;  %v552_v0 = vadd.f32 %v550_v45, %v547_v34 }
  0xce   :  { %350 = vrot.lane.b32.xlu2 %v347_v28, %s718_s26  ;;  %348 = vrot.lane.b32.xlu1 %v346_v29, %s718_s26 }
  0xcf   :  { %553 = vrot.lane.b32.xlu0 %v551_v33, %s719_s27 }
  0xd6   :  { %555 = vrot.lane.b32.xlu1 %v552_v0, %s719_s27 }
 0x128   :  { %v351_v20 = vpop.permute.xlu2 %350 }
 0x140   :  { %v349_v43 = vpop.permute.xlu1 %348 }
 0x141   :  { %v354_v39 = vsel %vm352_vm6, %v351_v20, %v349_v43  ;;  %v353_v16 = vsel %vm352_vm6, %v349_v43, %v351_v20  ;;  %v554_v21 = vpop.permute.xlu0 %553 }
 0x142   :  { %v355_v27 = vsel %vm102_vm7, %v354_v39, 0.0  ;;  %v358_v47 = vadd.f32 %v353_v16, %v251_v44 }
 0x143   :  { %v357_v48 = vadd.f32 %v355_v27, %v251_v44 }
 0x144   :  { %v456_v54 = vadd.f32 %v454_v37, %v358_v47 }
 0x145   :  { %v455_v49 = vadd.f32 %v453_v5, %v357_v48 }
 0x148   :  { %v556_v52 = vpop.permute.xlu1 %555 }
 0x149   :  { %v559_v58 = vsel %vm557_vm8, %v556_v52, %v554_v21  ;;  %v558_v40 = vsel %vm557_vm8, %v554_v21, %v556_v52 }
 0x14a   :  { %v561_v25 = vsel %vm105_vm9, %v559_v58, 0.0  ;;  %v562_v53 = vadd.f32 %v558_v40, %v455_v49 }
 0x14b   :  { %v563_v32 = vadd.f32 %v561_v25, %v456_v54 }
 0x14d   :  { %v566_v56 = vrot.slane %v563_v32, 7 }
 0x14f   :  { %v568_v17 = vsel %vm567_vm10, %v562_v53, %v566_v56  ;;  %v570_v42 = vsel %vm569_vm11, %v562_v53, %v566_v56 }
 0x150   :  { %v571_v55 = vrot.slane %v570_v42, 1  ;;  %578 = vst.msk [vmem:[#allocation7] sm:$0x3] %vm576_vm12, %v568_v17 }
 0x152   :  { %579 = vst.msk [vmem:[#allocation7 + $0x2] sm:$0x3] %vm576_vm12, %v571_v55 }
 0x153   :  { %592 = dma.vmem_to_hbm [thread:$0]  %s585_s30, 64, %s587_s5, [#allocation6], %s721_s6, %s721_s6, %s722_s7  }
 0x154   :  { %710 = dma.done.wait [#allocation6], 64  }
 0x155   :  { %711 = vsyncadd [#allocation6], 4294967232 }
 0x156   :  { %597 = vsyncpa [#allocation5], 1 }
 0x157   :  { %598 = vsyncpa [#allocation6], 1 }

</bundles_post_ra>
